<compile_context>
chip_gen: v6e
topology: v6e:2x2x1
jax: 0.10.0
libtpu: 0.0.40
codegen_flags: <defaults>
</compile_context>

<pallas_src>
import jax
import jax.numpy as jnp
from jax.experimental import pallas as pl
from jax.experimental.pallas import tpu as pltpu

LANE = 128
SUBLANE = 8


def _round_up(x, m):
    return (x + m - 1) // m * m


# ----------------------------------------------------------------------------
# Pallas kernel: one grid step = one generated "neighbor" linear
# ----------------------------------------------------------------------------
def _gen_linear_kernel(x_ref, w_ref, b_ref, o_ref):
    # x_ref: (Np, Kp)   w_ref: (1, Kp, Op)   b_ref: (1, 1, Op)   o_ref: (1, Np, Op)
    y = jnp.dot(x_ref[...], w_ref[0], preferred_element_type=jnp.float32)
    o_ref[0] = (y + b_ref[0]).astype(o_ref.dtype)


def mlp_generator_forward(params, embedding):
    """neighbors[s] = embedding @ W_t[s] + b[s]  ->  [sample_size, N, output_dim]."""
    w_t = params["w_t"]          # (S, Kp, Op), zero-padded
    b = params["b"]              # (S, 1, Op), zero-padded
    in_dim = params["input_dim"]
    out_dim = params["output_dim"]
    s, kp, op = w_t.shape
    n = embedding.shape[0]
    np_ = _round_up(n, SUBLANE)

    # Zero-pad batch rows / feature cols to (8,128)-aligned sizes (zeros in the
    # reduction dim do not change the matmul result).
    x_p = jnp.zeros((np_, kp), jnp.float32).at[:n, :in_dim].set(
        embedding.astype(jnp.float32))

    out_p = pl.pallas_call(
        _gen_linear_kernel,
        out_shape=jax.ShapeDtypeStruct((s, np_, op), jnp.float32),
        grid_spec=pltpu.PrefetchScalarGridSpec(
            num_scalar_prefetch=0,
            grid=(s,),
            in_specs=[
                pl.BlockSpec((np_, kp), lambda i: (0, 0)),       # embedding: VMEM-resident
                pl.BlockSpec((1, kp, op), lambda i: (i, 0, 0)),  # per-sample weight
                pl.BlockSpec((1, 1, op), lambda i: (i, 0, 0)),   # per-sample bias
            ],
            out_specs=pl.BlockSpec((1, np_, op), lambda i: (i, 0, 0)),
        ),
        compiler_params=pltpu.CompilerParams(
            dimension_semantics=("parallel",),   # independent per-sample blocks
        ),
    )(x_p, w_t, b)

    return out_p[:, :n, :out_dim]


# ----------------------------------------------------------------------------
# Parameter init (PyTorch nn.Linear-like: U(-1/sqrt(fan_in), 1/sqrt(fan_in)))
# Weights stored already transposed (in_dim, out_dim) and zero-padded to lane width.
# ----------------------------------------------------------------------------
def init_mlp_generator_params(key, input_dim, output_dim, sample_size):
    kp = _round_up(input_dim, LANE)
    op = _round_up(output_dim, LANE)
    bound = 1.0 / float(input_dim) ** 0.5

    keys = jax.random.split(key, 2 * sample_size)
    w_t = jnp.zeros((sample_size, kp, op), jnp.float32)
    b = jnp.zeros((sample_size, 1, op), jnp.float32)
    for i in range(sample_size):
        wi = jax.random.uniform(keys[2 * i], (input_dim, output_dim),
                                jnp.float32, -bound, bound)
        bi = jax.random.uniform(keys[2 * i + 1], (1, output_dim),
                                jnp.float32, -bound, bound)
        w_t = w_t.at[i, :input_dim, :output_dim].set(wi)
        b = b.at[i, :, :output_dim].set(bi)

    return {
        "w_t": w_t,
        "b": b,
        "input_dim": input_dim,
        "output_dim": output_dim,
        "sample_size": sample_size,
    }


# ----------------------------------------------------------------------------
# Pure-JAX reference for a correctness check
# ----------------------------------------------------------------------------
def mlp_generator_ref(params, embedding):
    in_dim = params["input_dim"]
    out_dim = params["output_dim"]
    w = params["w_t"][:, :in_dim, :out_dim]          # (S, in, out)
    b = params["b"][:, :, :out_dim]                  # (S, 1, out)
    return jnp.einsum("nk,sko->sno", embedding, w) + b


if __name__ == "__main__":
    INPUT_DIM = 16
    OUTPUT_DIM = 8
    SAMPLE_SIZE = 5
    BATCH = 8

    key = jax.random.PRNGKey(0)
    k_params, k_x = jax.random.split(key)

    params = init_mlp_generator_params(k_params, INPUT_DIM, OUTPUT_DIM, SAMPLE_SIZE)
    embedding = jax.random.normal(k_x, (BATCH, INPUT_DIM), jnp.float32)

    out = mlp_generator_forward(params, embedding)
    out = jax.block_until_ready(out)

    ref = mlp_generator_ref(params, embedding)
    assert out.shape == (SAMPLE_SIZE, BATCH, OUTPUT_DIM), out.shape
    assert jnp.allclose(out, ref, atol=1e-5, rtol=1e-5), "mismatch vs reference"

    print("KERNEL_OK")
</pallas_src>

<mosaic_0001>
module attributes {stable_mosaic.version = 11 : i64} {
  func.func @_gen_linear_kernel(%arg0: i32, %arg1: memref<8x128xf32, #tpu.memory_space<vmem>>, %arg2: memref<1x128x128xf32, #tpu.memory_space<vmem>>, %arg3: memref<1x1x128xf32, #tpu.memory_space<vmem>>, %arg4: memref<1x8x128xf32, #tpu.memory_space<vmem>>) attributes {dimension_semantics = [#tpu.dimension_semantics<parallel>], iteration_bounds = array<i64: 5>, scalar_prefetch = 0 : i64, scratch_operands = 0 : i64, tpu.core_type = #tpu.core_type<tc>, window_params = [{pipeline_mode = #tpu.pipeline_mode<synchronous>, transform_indices = @transform_0, window_bounds = array<i64: 8, 128>}, {transform_indices = @transform_1, window_bounds = array<i64: 1, 128, 128>}, {transform_indices = @transform_2, window_bounds = array<i64: 1, 1, 128>}, {transform_indices = @transform_3, window_bounds = array<i64: 1, 8, 128>}]} {
    %c0 = arith.constant 0 : index
    %c0_0 = arith.constant 0 : index
    %0 = vector.load %arg1[%c0, %c0_0] : memref<8x128xf32, #tpu.memory_space<vmem>>, vector<8x128xf32>
    %c0_1 = arith.constant 0 : index
    %c0_2 = arith.constant 0 : index
    %c0_3 = arith.constant 0 : index
    %1 = vector.load %arg2[%c0_1, %c0_2, %c0_3] : memref<1x128x128xf32, #tpu.memory_space<vmem>>, vector<1x128x128xf32>
    %2 = vector.shape_cast %1 : vector<1x128x128xf32> to vector<128x128xf32>
    %cst = arith.constant dense<0.000000e+00> : vector<8x128xf32>
    %3 = tpu.matmul %0, %2, %cst {dimension_numbers = #tpu.dot_dimension_numbers<[1], [0], [0], [1], [0, 0, 1, 1], [], []>} : vector<8x128xf32>, vector<128x128xf32>, vector<8x128xf32> -> vector<8x128xf32>
    %c0_4 = arith.constant 0 : index
    %c0_5 = arith.constant 0 : index
    %c0_6 = arith.constant 0 : index
    %4 = vector.load %arg3[%c0_4, %c0_5, %c0_6] : memref<1x1x128xf32, #tpu.memory_space<vmem>>, vector<1x1x128xf32>
    %5 = vector.shape_cast %4 : vector<1x1x128xf32> to vector<1x128xf32>
    %6 = vector.broadcast %5 : vector<1x128xf32> to vector<8x128xf32>
    %7 = arith.addf %3, %6 : vector<8x128xf32>
    %c0_7 = arith.constant 0 : index
    %c0_8 = arith.constant 0 : index
    %c0_9 = arith.constant 0 : index
    %8 = vector.load %arg4[%c0_7, %c0_8, %c0_9] : memref<1x8x128xf32, #tpu.memory_space<vmem>>, vector<1x8x128xf32>
    %9 = vector.shape_cast %8 : vector<1x8x128xf32> to vector<8x128xf32>
    %10 = vector.shape_cast %7 : vector<8x128xf32> to vector<1x8x128xf32>
    tpu.vector_store %arg4[%c0_7, %c0_8, %c0_9], %10 {strides = array<i32>} : memref<1x8x128xf32, #tpu.memory_space<vmem>>, vector<1x8x128xf32>,
    return
  }
  func.func @transform_0(%arg0: i32) -> (i32, i32) {
    %c0_i32 = arith.constant 0 : i32
    %c0_i32_0 = arith.constant 0 : i32
    %c0_i32_1 = arith.constant 0 : i32
    return %c0_i32, %c0_i32_0 : i32, i32
  }
  func.func @transform_1(%arg0: i32) -> (i32, i32, i32) {
    %c0_i32 = arith.constant 0 : i32
    %c0_i32_0 = arith.constant 0 : i32
    %c0_i32_1 = arith.constant 0 : i32
    return %arg0, %c0_i32, %c0_i32_0 : i32, i32, i32
  }
  func.func @transform_2(%arg0: i32) -> (i32, i32, i32) {
    %c0_i32 = arith.constant 0 : i32
    %c0_i32_0 = arith.constant 0 : i32
    %c0_i32_1 = arith.constant 0 : i32
    return %arg0, %c0_i32, %c0_i32_0 : i32, i32, i32
  }
  func.func @transform_3(%arg0: i32) -> (i32, i32, i32) {
    %c0_i32 = arith.constant 0 : i32
    %c0_i32_0 = arith.constant 0 : i32
    %c0_i32_1 = arith.constant 0 : i32
    return %arg0, %c0_i32, %c0_i32_0 : i32, i32, i32
  }
}

</mosaic_0001>

<bundles_post_ra>
// kernel: tpu_custom_call.1
= control target key start
LH: loop header
LB: loop body
LE: loop exit
PB: predicated region body
PF: predicated region fallthrough
CT: control target
= control target key end

     0   :  { %8 = vsyncpa [#allocation3], 0  ;;  %s991_s0 = inlined_call_operand.hbm [shape: f32[8,128], index: 0, kind: input, shape index: {}]   ;;  %s992_s1 = inlined_call_operand.hbm [shape: f32[5,128,128], index: 1, kind: input, shape index: {}]   ;;  %s993_s2 = inlined_call_operand.hbm [shape: f32[5,1,128], index: 2, kind: input, shape index: {}]   ;;  %s994_s3 = inlined_call_operand.hbm [shape: f32[5,8,128], index: 3, kind: output, shape index: {}]  }
   0x1   :  { %9 = vsyncpa [#allocation6], 0 }
   0x2   :  { %11 = vsyncpa [#allocation6 + $0x1], 0 }
   0x3   :  { %12 = vsyncpa [#allocation4], 0 }
   0x4   :  { %14 = vsyncpa [#allocation4 + $0x1], 0  ;;  %s757_s12 = smov 0   ;;  %s759_s13 = smov 0  }
   0x5   :  { %s761_s14 = smov 0   ;;  %s763_s15 = smov 0  }
   0x6 LB: > { %s778_s16 = sadd.s32 1, %s727_s15   ;;  %s48_s17 = sadd.s32 1, %s723_s14  ;;  %s727_s15 = sphi %s763_s15, %s1016_s15   ;;  %s723_s14 = sphi %s761_s14, %s1015_s14   ;;  %s719_s13 = sphi %s759_s13, %s1014_s13   ;;  %s715_s12 = sphi %s757_s12, %s1013_s12  }
   0x7   : > { %s45_s18 = ssub.s32 %s727_s15, %s778_s16  ;;  %p55_p0 = scmp.ne.s32.totalorder %s723_s14, %s719_s13 }
   0x8   : > { %p46_p1 = scmp.eq.s32.totalorder %s45_s18, 0  ;;  %p56_p2 = scmp.eq.s32.totalorder %s727_s15, 0 }
   0x9   : > { %p537_p3 = scmp.lt.s32.totalorder %s727_s15, 5  ;;  %s148_s20 = sand.u32 1, %s727_s15  }
   0xa   : > { %s788_s19 = scalar_select %p46_p1, %s723_s14, %s48_s17  }
   0xb   : > { %p57_p4 = por %p56_p2, %p55_p0  ;;  %s150_s21 = sand.u32 1, %s723_s14  }
   0xc   : > { %s445_s22 = sshll.u32 %s150_s21, 7  ;;  %s458_s23 = sshll.u32 %s727_s15, 11 }
   0xd   : > { %s801_s26 = scalar_lea.hbm %s992_s1, %s458_s23  ;;  %s152_s27 = scalar_lea.vmem [#allocation5], %s445_s22 }
   0xe   : > { %s159_s28 = sshll.u32 %s152_s27, 4  ;;  %p803_p5 = pnand %p537_p3, %p57_p4  ;;  %s807_s28 = int_to_ptr.vmem [resolvable:$true] %s159_s28 }
   0xf   : > { %s809_s30 = scalar_lea.sflag [#allocation6], %s148_s20  ;;  %s577_s4 = scalar_lea.hbm %s801_s26, 2048 }
  0x10   : > { %p578_p6 = scmp.ne.s32.totalorder %s801_s26, %s577_s4  ;;  %p579_p7 = pneg %p803_p5 }
  0x11   : > { %s582_s7 = scalar_lea.hbm %s992_s1, 10240  ;;  %p583_p10 = scmp.lt.s32.totalorder %s801_s26, %s992_s1 }
  0x12   : > { %p580_p8 = pnand %p579_p7, %p578_p6  ;;  %p584_p11 = scmp.lt.s32.totalorder %s582_s7, %s577_s4 }
  0x14   : > { %p581_p9 = pneg %p580_p8  ;;  %p585_p12 = por %p584_p11, %p583_p10 }
  0x16   : > { %p586_p13 = pnand %p585_p12, %p581_p9 }
  0x18   : > { %589 = shalt.err (!%p586_p13)
}
  0x19   : > { %s590_s10 = scalar_lea.vmem %s807_s28, 2048  ;;  %s729_s11 = smov [#allocation5]  }
  0x1a   : > { %p591_p1 = scmp.ne.s32.totalorder %s807_s28, %s590_s10  ;;  %s595_s17 = sshll.u32 %s729_s11, 4  ;;  %s596_s17 = int_to_ptr.vmem [resolvable:$false] %s595_s17 }
  0x1b   : > { %s597_s18 = scalar_lea.vmem %s596_s17, 4096  ;;  %p598_p4 = scmp.lt.s32.totalorder %s807_s28, %s596_s17 }
  0x1c   : > { %p593_p2 = pnand %p591_p1, %p579_p7  ;;  %p599_p6 = scmp.lt.s32.totalorder %s597_s18, %s590_s10 }
  0x1e   : > { %p594_p3 = pneg %p593_p2  ;;  %p600_p8 = por %p599_p6, %p598_p4 }
  0x20   : > { %p601_p10 = pnand %p600_p8, %p594_p3 }
  0x22   : > { %604 = shalt.err (!%p601_p10)
}
  0x23   : > { %s730_s20 = smov 128   ;;  %s731_s22 = smov 8  }
  0x24   : > { %528 = dma.hbm_to_vmem [thread:$0]  (!%p803_p5), %s801_s26, 2048, %s807_s28, %s809_s30, %s730_s20, %s730_s20, %s731_s22  }
  0x25   : > { %s837_s23 = sadd.s32 4294967295, %s727_s15   ;;  %s441_s24 = sadd.s32 4294967294, %s727_s15  }
  0x26   : > { %p61_p9 = scmp.ne.s32.totalorder %s719_s13, %s715_s12  ;;  %p995_p11 = scmp.eq.s32.totalorder %s837_s23, 0 }
  0x27   : > { %p111_p12 = scmp.eq.s32.totalorder %s837_s23, 4  ;;  %p117_p13 = scmp.eq.s32.totalorder %s441_s24, 4 }
  0x28   : > { %p846_p1 = por %p995_p11, %p61_p9  ;;  %p442_p2 = scmp.ge.s32.totalorder %s727_s15, 1 }
  0x29   : > { %p854_p3 = por %p111_p12, %p55_p0  ;;  %p858_p4 = por %p117_p13, %p61_p9 }
  0x2a   : > { %s1001_s25 = scalar_select %p846_p1, 1, 0 }
  0x2b   : > { %s1002_s26 = scalar_select %p854_p3, 1, 0 }
  0x2c   : > { %s1003_s27 = scalar_select %p858_p4, 1, 0 }
  0x2d   : > { %p124_p6 = scmp.lt.s32.totalorder %s727_s15, 6  ;;  %s732_s4 = smov [#allocation2]  }
  0x2e   : > { %s137_s5 = sshll.u32 %s732_s4, 4  ;;  %s448_s6 = sshll.u32 %s727_s15, 4  ;;  %s875_s5 = int_to_ptr.vmem [resolvable:$true] %s137_s5 }
  0x2f   : > { %p863_p8 = pnand %p442_p2, %p124_p6  ;;  %s873_s9 = scalar_lea.hbm %s993_s2, %s448_s6 }
  0x30   : > { %s172_s10 = scalar_lea.vmem [#allocation7], %s150_s21  ;;  %s605_s18 = scalar_lea.hbm %s873_s9, 16 }
  0x31   : > { %s1004_s28 = scalar_select %p863_p8, 1, 0 }
  0x32   : > { %p521_p10 = pneg %p863_p8  ;;  %s179_s11 = sshll.u32 %s172_s10, 4  ;;  %s180_s11 = int_to_ptr.vmem [resolvable:$true] %s179_s11 }
  0x33   : > { %p606_p9 = scmp.ne.s32.totalorder %s873_s9, %s605_s18  ;;  %s610_s24 = scalar_lea.hbm %s993_s2, 80 }
  0x34   : > { %p881_p0 = pnand %p521_p10, %p995_p11  ;;  %p611_p2 = scmp.lt.s32.totalorder %s873_s9, %s993_s2 }
  0x35   : > { %p608_p12 = pnand %p606_p9, %p579_p7  ;;  %p612_p6 = scmp.lt.s32.totalorder %s610_s24, %s605_s18 }
  0x36   : > { %s1005_s17 = scalar_select %p881_p0, 1, 0 }
  0x37   : > { %p609_p13 = pneg %p608_p12  ;;  %p613_p10 = por %p612_p6, %p611_p2 }
  0x39   : > { %p614_p11 = pnand %p613_p10, %p609_p13 }
  0x3b   : > { %617 = shalt.err (!%p614_p11)
}
  0x3c   : > { %s618_s21 = scalar_lea.vmem %s180_s11, 16  ;;  %s733_s7 = smov [#allocation7]  }
  0x3d   : > { %p619_p4 = scmp.ne.s32.totalorder %s180_s11, %s618_s21  ;;  %s623_s8 = sshll.u32 %s733_s7, 4  ;;  %s624_s8 = int_to_ptr.vmem [resolvable:$false] %s623_s8 }
  0x3e   : > { %s625_s10 = scalar_lea.vmem %s624_s8, 32  ;;  %p626_p12 = scmp.lt.s32.totalorder %s180_s11, %s624_s8 }
  0x3f   : > { %p621_p3 = pnand %p619_p4, %p579_p7  ;;  %p627_p1 = scmp.lt.s32.totalorder %s625_s10, %s618_s21 }
  0x41   : > { %p622_p9 = pneg %p621_p3  ;;  %p628_p8 = por %p627_p1, %p626_p12 }
  0x43   : > { %p629_p0 = pnand %p628_p8, %p622_p9 }
  0x45   : > { %632 = shalt.err (!%p629_p0)
}
  0x46   : > { %531 = dma.hbm_to_vmem [thread:$0]  (!%p803_p5), %s873_s9, 16, %s180_s11, %s809_s30  }
  0x47   : > { %p1006_p7 = scmp.ne.s32.totalorder %s1005_s17, 0  ;;  %s644_s18 = scalar_lea.vmem %s875_s5, 128 }
  0x48   : > { %p645_p3 = scmp.ne.s32.totalorder %s875_s5, %s644_s18  ;;  %p652_p2 = scmp.lt.s32.totalorder %s875_s5, %s875_s5 }
  0x49   : > { %p635_p11 = pneg %p1006_p7  ;;  %p653_p1 = scmp.lt.s32.totalorder %s644_s18, %s644_s18 }
  0x4b   : > { %p647_p4 = pnand %p645_p3, %p635_p11  ;;  %p654_p8 = por %p653_p1, %p652_p2 }
  0x4d   : > { %p648_p13 = pneg %p647_p4 }
  0x4f   : > { %p655_p0 = pnand %p654_p8, %p648_p13 }
  0x51   : > { %658 = shalt.err (!%p655_p0)
}
  0x52   : > { %524 = dma.hbm_to_vmem [thread:$0]  (!%p1006_p7), %s991_s0, 128, %s875_s5, [#allocation3]  }
  0x53   : > { %p1007_p5 = scmp.ne.s32.totalorder %s1004_s28, 0 }
  0x54   : > { %p1008_p6 = scmp.eq.s32.totalorder (!%p1007_p5), %s837_s23, 0 }
  0x55   : > { %188 = sbr.rel (%p1007_p5) target bundleno = 337 (0x151), region = 32 }
  0x5a   : > { %702 = dma.done.wait (%p1008_p6), [#allocation3], 128   ;;  %p1009_p10 = pmov %p1008_p6 }
  0x5b   : > { %s194_s30 = sand.u32 1, %s837_s23   ;;  %s924_s9 = sand.u32 1, %s719_s13  }
  0x5c   : > { %704 = vsyncadd (%p1009_p10), [#allocation3], 4294967168  ;;  %s451_s11 = sshll.u32 %s924_s9, 7  ;;  %s195_s17 = scalar_lea.sflag [#allocation6], %s194_s30 }
  0x5d   : > { %s927_s22 = scalar_lea.vmem [#allocation5], %s451_s11  ;;  %p1010_p9 = scmp.ne.s32.totalorder %s1001_s25, 0 }
  0x5f   : > { %706 = dma.done.wait (%p1010_p9), %s195_s17, 2064  }
  0x60   : > { %708 = vsyncadd (%p1010_p9), %s195_s17, 4294965232  ;;  %v734_v0 = vmov 0.0   ;;  %vm735_vm0 = vmmov 0   ;;  %v249_v1 = vld [vmem:[%s927_s22 + $0x78] sm:$0xff]  ;;  %v248_v2 = vld [vmem:[%s927_s22 + $0x70] sm:$0xff]  ;;  %s452_s25 = sshll.u32 %s924_s9, 3 }
  0x61   : > { %476 = vmatprep.subr.mxu0 %v734_v0  ;;  %508 = vmatprep.mubr.msk.f32.mxu0 %vm735_vm0, %v734_v0  ;;  %v247_v3 = vld [vmem:[%s927_s22 + $0x68] sm:$0xff]  ;;  %v246_v4 = vld [vmem:[%s927_s22 + $0x60] sm:$0xff]  ;;  %v245_v5 = vld [vmem:[%s927_s22 + $0x58] sm:$0xff]  ;;  %s206_s28 = scalar_lea.vmem [#allocation7], %s924_s9  ;;  %s455_s5 = sshll.u32 %s837_s23, 7 }
  0x62   : > { %477 = vmatpush3.msra.mxu0 %v249_v1  ;;  %v244_v6 = vld [vmem:[%s927_s22 + $0x50] sm:$0xff]  ;;  %v243_v7 = vld [vmem:[%s927_s22 + $0x48] sm:$0xff]  ;;  %v242_v8 = vld [vmem:[%s927_s22 + $0x40] sm:$0xff]  ;;  %s232_s24 = scalar_lea.vmem [#allocation8], %s452_s25  ;;  %s955_s7 = scalar_lea.hbm %s994_s3, %s455_s5 }
  0x63   : > { %478 = vmatprep.subr.mxu0 %v734_v0  ;;  %v241_v9 = vld [vmem:[%s927_s22 + $0x38] sm:$0xff]  ;;  %v240_v10 = vld [vmem:[%s927_s22 + $0x30] sm:$0xff]  ;;  %v239_v11 = vld [vmem:[%s927_s22 + $0x28] sm:$0xff]  ;;  %s342_s4 = sshll.u32 %s232_s24, 4  ;;  %s329_s8 = scalar_lea.sflag [#allocation4], %s924_s9  ;;  %s343_s4 = int_to_ptr.vmem [resolvable:$true] %s342_s4 }
  0x64   : > { %479 = vmatpush3.msra.mxu0 %v248_v2  ;;  %v238_v12 = vld [vmem:[%s927_s22 + $0x20] sm:$0xff]  ;;  %v237_v13 = vld [vmem:[%s927_s22 + $0x18] sm:$0xff]  ;;  %v236_v14 = vld [vmem:[%s927_s22 + $0x10] sm:$0xff]  ;;  %s659_s10 = scalar_lea.vmem %s343_s4, 128  ;;  %p1011_p7 = scmp.ne.s32.totalorder %s1002_s26, 0 }
  0x65   : > { %480 = vmatprep.subr.mxu0 %v734_v0  ;;  %v235_v15 = vld [vmem:[%s927_s22 + $0x8] sm:$0xff]  ;;  %v234_v16 = vld [vmem:[%s927_s22] sm:$0xff]  ;;  %v233_v17 = vld [vmem:[#allocation2] sm:$0xff]  ;;  %p660_p12 = scmp.ne.s32.totalorder %s343_s4, %s659_s10  ;;  %s736_s18 = smov [#allocation8]  }
  0x66   : > { %481 = vmatpush3.msra.mxu0 %v247_v3  ;;  %v453_v18 = vld [vmem:[%s206_s28] ss:$0 sm:$0xff]  ;;  %s663_s23 = sshll.u32 %s736_s18, 4  ;;  %s664_s23 = int_to_ptr.vmem [resolvable:$false] %s663_s23 }
  0x67   : > { %482 = vmatprep.subr.mxu0 %v734_v0  ;;  %p661_p11 = pnand %p660_p12, %p1011_p7  ;;  %s665_s29 = scalar_lea.vmem %s664_s23, 256 }
  0x68   : > { %483 = vmatpush3.msra.mxu0 %v246_v4  ;;  %p666_p4 = scmp.lt.s32.totalorder %s343_s4, %s664_s23  ;;  %p667_p13 = scmp.lt.s32.totalorder %s665_s29, %s659_s10 }
  0x69   : > { %484 = vmatprep.subr.mxu0 %v734_v0  ;;  %p662_p3 = pneg %p661_p11 }
  0x6a   : > { %485 = vmatpush3.msra.mxu0 %v245_v5  ;;  %p668_p2 = por %p667_p13, %p666_p4 }
  0x6b   : > { %486 = vmatprep.subr.mxu0 %v734_v0 }
  0x6c   : > { %487 = vmatpush3.msra.mxu0 %v244_v6  ;;  %p669_p1 = pnand %p668_p2, %p662_p3 }
  0x6d   : > { %488 = vmatprep.subr.mxu0 %v734_v0 }
  0x6e   : > { %489 = vmatpush3.msra.mxu0 %v243_v7 }
  0x6f   : > { %490 = vmatprep.subr.mxu0 %v734_v0 }
  0x70   : > { %491 = vmatpush3.msra.mxu0 %v242_v8 }
  0x71   : > { %492 = vmatprep.subr.mxu0 %v734_v0 }
  0x72   : > { %493 = vmatpush3.msra.mxu0 %v241_v9 }
  0x73   : > { %494 = vmatprep.subr.mxu0 %v734_v0 }
  0x74   : > { %495 = vmatpush3.msra.mxu0 %v240_v10 }
  0x75   : > { %496 = vmatprep.subr.mxu0 %v734_v0 }
  0x76   : > { %497 = vmatpush3.msra.mxu0 %v239_v11 }
  0x77   : > { %498 = vmatprep.subr.mxu0 %v734_v0 }
  0x78   : > { %499 = vmatpush3.msra.mxu0 %v238_v12 }
  0x79   : > { %500 = vmatprep.subr.mxu0 %v734_v0 }
  0x7a   : > { %501 = vmatpush3.msra.mxu0 %v237_v13 }
  0x7b   : > { %502 = vmatprep.subr.mxu0 %v734_v0 }
  0x7c   : > { %503 = vmatpush3.msra.mxu0 %v236_v14 }
  0x7d   : > { %504 = vmatprep.subr.mxu0 %v734_v0 }
  0x7e   : > { %505 = vmatpush3.msra.mxu0 %v235_v15 }
  0x7f   : > { %506 = vmatprep.subr.mxu0 %v734_v0 }
  0x80   : > { %507 = vmatpush3.msra.mxu0 %v234_v16 }
  0x81   : > { %509 = vmatmul.mubr.f32.vlgmr.msra.gmra.mxu0 %v233_v17 }
 0x141   : > { %v323_v19 = vpop.f32.mrf.mxu0 }
 0x142   : > { %v324_v20 = vadd.f32 %v453_v18, %v323_v19 }
 0x143   : > { %v510_v21 = vpop.f32.mrf.mxu0 }
 0x144   : > { %327 = vst [vmem:[%s232_s24] sm:$0xff] %v324_v20 }
 0x145   : > { %672 = shalt.err (!%p669_p1)
}
 0x146   : > { %s673_s20 = scalar_lea.hbm %s955_s7, 128  ;;  %s677_s11 = scalar_lea.hbm %s994_s3, 640 }
 0x147   : > { %p674_p8 = scmp.ne.s32.totalorder %s955_s7, %s673_s20  ;;  %p678_p6 = scmp.lt.s32.totalorder %s955_s7, %s994_s3 }
 0x148   : > { %p679_p10 = scmp.lt.s32.totalorder %s677_s11, %s673_s20 }
 0x149   : > { %p675_p0 = pnand %p674_p8, %p1011_p7 }
 0x14a   : > { %p680_p9 = por %p679_p10, %p678_p6 }
 0x14b   : > { %p676_p5 = pneg %p675_p0 }
 0x14d   : > { %p681_p12 = pnand %p680_p9, %p676_p5 }
 0x14f   : > { %684 = shalt.err (!%p681_p12)
}
 0x150   : > { %519 = dma.vmem_to_hbm [thread:$0]  (%p1011_p7), %s343_s4, 128, %s955_s7, %s329_s8  }
 0x151 PF: > { %p539_p11 = scmp.ge.s32.totalorder %s727_s15, 2  ;;  %s354_s25 = sand.u32 1, %s715_s12  }
 0x152   : > { %p1012_p3 = scmp.ne.s32.totalorder %s1003_s27, 0  ;;  %s355_s28 = scalar_lea.sflag [#allocation4], %s354_s25 }
 0x154   : > { %p533_p4 = pnand %p539_p11, %p1012_p3 }
 0x156   : > { %p534_p13 = pneg %p533_p4 }
 0x158   : > { %710 = dma.done.wait (%p534_p13), %s355_s28, 128  }
 0x159   : > { %712 = vsyncadd (%p534_p13), %s355_s28, 4294967168  ;;  %p17_p2 = scmp.ge.s32.totalorder %s778_s16, 7   ;;  %s1013_s12 = smov %s719_s13 }
 0x15a   : > { %s1014_s13 = smov %s723_s14  ;;  %s1015_s14 = smov %s788_s19 }
 0x15b   : > { %s1016_s15 = smov %s778_s16  ;;  %19 = sbr.rel (!%p17_p2) target bundleno = 6 (0x6), region = 93 }
 0x160   :  { %360 = vsyncpa [#allocation3], 1 }
 0x161   :  { %362 = vsyncpa [#allocation3 + $0x1], 1 }
 0x162   :  { %363 = vsyncpa [#allocation6], 1 }
 0x163   :  { %365 = vsyncpa [#allocation6 + $0x1], 1 }
 0x164   :  { %366 = vsyncpa [#allocation4], 1 }
 0x165   :  { %368 = vsyncpa [#allocation4 + $0x1], 1 }

</bundles_post_ra>
